<compile_context>
chip_gen: v6e
topology: v6e:2x2x1
jax: 0.10.0
libtpu: 0.0.40
codegen_flags: <defaults>
</compile_context>

<pallas_src>
import functools
import math

import jax
import jax.numpy as jnp
from jax.experimental import pallas as pl
from jax.experimental.pallas import tpu as pltpu

_EPS = 1e-07
_LANES = 128
_SUBLANE = 8
_BLOCK_SUBLANES = 1024      # max box-axis sublanes per grid step (1024*128 boxes)
_TARGET_STEPS = 4           # aim for >= 4 grid steps (pipelining + v7x 2-TC split)
_PALLAS_MIN_BOXES = 2048    # below this, fused XLA beats kernel launch + relayout


# --------------------------------------------------------------------------- #
# kernel bodies
# --------------------------------------------------------------------------- #
def _loss_body(pred_ref, tgt_ref, loss_type):
    """Elementwise loss on one (4, TS, 128) pred block + (4, TS, 128) target block."""
    # planes: 0=x 1=y 2=w 3=h ; upcast so bf16 slabs work (compute is f32).
    px = pred_ref[0].astype(jnp.float32)
    py = pred_ref[1].astype(jnp.float32)
    pw = pred_ref[2].astype(jnp.float32)
    ph = pred_ref[3].astype(jnp.float32)
    tx = tgt_ref[0].astype(jnp.float32)
    ty = tgt_ref[1].astype(jnp.float32)
    tw = tgt_ref[2].astype(jnp.float32)
    th = tgt_ref[3].astype(jnp.float32)

    # hoisted half-extents / corner coords (shared by intersection & enclosing box)
    hpw = pw * 0.5
    hph = ph * 0.5
    htw = tw * 0.5
    hth = th * 0.5
    p_x0 = px - hpw
    p_x1 = px + hpw
    p_y0 = py - hph
    p_y1 = py + hph
    t_x0 = tx - htw
    t_x1 = tx + htw
    t_y0 = ty - hth
    t_y1 = ty + hth

    # intersection
    tl_x = jnp.maximum(p_x0, t_x0)
    tl_y = jnp.maximum(p_y0, t_y0)
    br_x = jnp.minimum(p_x1, t_x1)
    br_y = jnp.minimum(p_y1, t_y1)

    area_p = pw * ph
    area_g = tw * th
    # single select instead of bool->f32 cast + multiply (VALU trim)
    area_i = jnp.where(jnp.logical_and(tl_x < br_x, tl_y < br_y),
                       (br_x - tl_x) * (br_y - tl_y), 0.0)
    area_u = area_p + area_g - area_i
    # keep the base IoU division exact (default path matches torch to ~1e-6)
    iou = area_i / (area_u + _EPS)

    if loss_type == "iou":
        return 1.0 - iou * iou

    # enclosing (convex) box — reuses the hoisted corners
    cw = jnp.maximum(p_x1, t_x1) - jnp.minimum(p_x0, t_x0)
    ch = jnp.maximum(p_y1, t_y1) - jnp.minimum(p_y0, t_y0)

    if loss_type == "giou":
        area_c = cw * ch
        inv_c = pl.reciprocal(jnp.maximum(area_c, _EPS), approx=True)
        giou = iou - (area_c - area_u) * inv_c
        return 1.0 - jnp.clip(giou, -1.0, 1.0)

    cw2 = cw * cw                       # hoisted: reused by eiou denominators
    ch2 = ch * ch
    inv_convex = pl.reciprocal(cw2 + ch2 + _EPS, approx=True)
    center_dis = (px - tx) ** 2 + (py - ty) ** 2

    if loss_type == "diou":
        diou = iou - center_dis * inv_convex
        return 1.0 - jnp.clip(diou, -1.0, 1.0)

    if loss_type == "ciou":
        a = tw * pl.reciprocal(jnp.maximum(th, _EPS), approx=True)
        b = pw * pl.reciprocal(jnp.maximum(ph, _EPS), approx=True)
        # atan(a) - atan(b) == atan((a-b)/(1+a*b)); valid because xywh boxes
        # have non-negative w/h so a, b >= 0 and 1 + a*b >= 1.
        datan = jnp.arctan((a - b) * pl.reciprocal(1.0 + a * b, approx=True))
        v = (4.0 / (math.pi ** 2)) * datan * datan
        # torch computes `beat` under no_grad -> stop_gradient
        beat = jax.lax.stop_gradient(
            v * pl.reciprocal(1.0 + _EPS - iou + v, approx=True))
        ciou = iou - (center_dis * inv_convex + beat * v)
        return 1.0 - jnp.clip(ciou, -1.0, 1.0)

    if loss_type == "eiou":
        dis_w = (pw - tw) ** 2
        dis_h = (ph - th) ** 2
        eiou = (iou
                - center_dis * inv_convex
                - dis_w * pl.reciprocal(cw2 + _EPS, approx=True)
                - dis_h * pl.reciprocal(ch2 + _EPS, approx=True))
        return 1.0 - jnp.clip(eiou, -1.0, 1.0)

    raise ValueError("loss_type wrong")


def _iou_loss_kernel(pred_ref, tgt_ref, out_ref, *, loss_type):
    out_ref[...] = _loss_body(pred_ref, tgt_ref, loss_type)


def _iou_loss_sum_kernel(pred_ref, tgt_ref, out_ref, *, loss_type, n_valid, ts):
    """Per-grid-step masked partial sum -> (1, 8, 128) slab (padded boxes excluded)."""
    loss = _loss_body(pred_ref, tgt_ref, loss_type)
    sub = jax.lax.broadcasted_iota(jnp.int32, loss.shape, 0)
    lane = jax.lax.broadcasted_iota(jnp.int32, loss.shape, 1)
    box_idx = (pl.program_id(0) * ts + sub) * _LANES + lane
    partial = jnp.sum(jnp.where(box_idx < n_valid, loss, 0.0))
    out_ref[...] = jnp.full(out_ref.shape, partial, dtype=jnp.float32)


# --------------------------------------------------------------------------- #
# tiling / layout helpers
# --------------------------------------------------------------------------- #
def _choose_tiling(n):
    """Pick (s, ts, grid): s = padded sublanes (grid * ts), ts = block sublanes."""
    s_min = max(_SUBLANE, pl.cdiv(n, _LANES))
    s_min = pl.cdiv(s_min, _SUBLANE) * _SUBLANE
    ts = min(_BLOCK_SUBLANES, max(_SUBLANE, pl.cdiv(s_min, _TARGET_STEPS)))
    grid = pl.cdiv(s_min, ts)
    if grid > 1 and grid % 2:
        grid += 1                                  # even step count for v7x 2-TC split
    # re-balance block size so padding stays small (no round-up to full 1024s)
    ts = pl.cdiv(pl.cdiv(s_min, grid), _SUBLANE) * _SUBLANE
    return grid * ts, ts, grid


def _choose_block_for_planes(s):
    """Largest multiple-of-8 divisor of s, <= _BLOCK_SUBLANES, aiming for >=4 steps."""
    cap = min(_BLOCK_SUBLANES, max(_SUBLANE, pl.cdiv(s, _TARGET_STEPS)))
    ts = _SUBLANE
    for cand in range(_SUBLANE, cap + 1, _SUBLANE):
        if s % cand == 0:
            ts = cand
    return ts, s // ts


def _to_planes(boxes4, n, s):
    """(n, 4) xywh -> (4, s, 128) component-major slab (pad fuses into transpose)."""
    n_pad = s * _LANES
    b = jnp.pad(boxes4, ((0, n_pad - n), (0, 0)))
    return b.T.reshape(4, s, _LANES)


# --------------------------------------------------------------------------- #
# pallas drivers
# --------------------------------------------------------------------------- #
def _pallas_run(pred_planes, tgt_planes, *, loss_type, n, ts, grid, reduction):
    s = pred_planes.shape[1]
    in_specs = [pl.BlockSpec((4, ts, _LANES), lambda i: (0, i, 0)),
                pl.BlockSpec((4, ts, _LANES), lambda i: (0, i, 0))]
    cparams = pltpu.CompilerParams(dimension_semantics=("parallel",))

    if reduction in ("mean", "sum"):
        partials = pl.pallas_call(
            functools.partial(_iou_loss_sum_kernel, loss_type=loss_type,
                              n_valid=n, ts=ts),
            out_shape=jax.ShapeDtypeStruct((grid, _SUBLANE, _LANES), jnp.float32),
            grid=(grid,),
            in_specs=in_specs,
            out_specs=pl.BlockSpec((1, _SUBLANE, _LANES), lambda i: (i, 0, 0)),
            compiler_params=cparams,
        )(pred_planes, tgt_planes)
        total = jnp.sum(partials[:, 0, 0])
        return total / n if reduction == "mean" else total

    out = pl.pallas_call(
        functools.partial(_iou_loss_kernel, loss_type=loss_type),
        out_shape=jax.ShapeDtypeStruct((s, _LANES), jnp.float32),
        grid=(grid,),
        in_specs=in_specs,
        out_specs=pl.BlockSpec((ts, _LANES), lambda i: (i, 0)),
        compiler_params=cparams,
    )(pred_planes, tgt_planes)
    return out.reshape(-1)[:n]


def iou_loss_from_planes(pred_planes, target_planes, *, n=None,
                         reduction="none", loss_type="iou"):
    """Zero-relayout entry point.

    pred_planes / target_planes: (4, S, 128) component-major [x, y, w, h] slabs
    (f32 or bf16 — bf16 halves input HBM traffic, compute stays f32).  Box b
    lives at (plane, b // 128, b % 128); `n` = number of valid boxes.
    """
    assert pred_planes.shape == target_planes.shape
    assert pred_planes.shape[0] == 4 and pred_planes.shape[2] == _LANES
    s = pred_planes.shape[1]
    assert s % _SUBLANE == 0, "S must be a multiple of 8"
    if n is None:
        n = s * _LANES
    ts, grid = _choose_block_for_planes(s)
    return _pallas_run(pred_planes, target_planes, loss_type=loss_type,
                       n=n, ts=ts, grid=grid, reduction=reduction)


# --------------------------------------------------------------------------- #
# pure-JAX reference / small-N fallback (mirrors the PyTorch forward)
# --------------------------------------------------------------------------- #
def _iou_loss_ref(pred, target, loss_type="iou"):
    tl = jnp.maximum(pred[:, :2] - pred[:, 2:] / 2, target[:, :2] - target[:, 2:] / 2)
    br = jnp.minimum(pred[:, :2] + pred[:, 2:] / 2, target[:, :2] + target[:, 2:] / 2)
    area_p = jnp.prod(pred[:, 2:], axis=1)
    area_g = jnp.prod(target[:, 2:], axis=1)
    en = jnp.prod((tl < br).astype(pred.dtype), axis=1)
    area_i = jnp.prod(br - tl, axis=1) * en
    area_u = area_p + area_g - area_i
    iou = area_i / (area_u + _EPS)
    if loss_type == "iou":
        return 1.0 - iou ** 2
    cmin = jnp.minimum(pred[:, :2] - pred[:, 2:] / 2, target[:, :2] - target[:, 2:] / 2)
    cmax = jnp.maximum(pred[:, :2] + pred[:, 2:] / 2, target[:, :2] + target[:, 2:] / 2)
    if loss_type == "giou":
        area_c = jnp.prod(cmax - cmin, axis=1)
        giou = iou - (area_c - area_u) / jnp.maximum(area_c, _EPS)
        return 1.0 - jnp.clip(giou, -1.0, 1.0)
    convex_dis = (cmax[:, 0] - cmin[:, 0]) ** 2 + (cmax[:, 1] - cmin[:, 1]) ** 2 + _EPS
    center_dis = (pred[:, 0] - target[:, 0]) ** 2 + (pred[:, 1] - target[:, 1]) ** 2
    if loss_type == "diou":
        return 1.0 - jnp.clip(iou - center_dis / convex_dis, -1.0, 1.0)
    if loss_type == "ciou":
        v = (4.0 / math.pi ** 2) * (
            jnp.arctan(target[:, 2] / jnp.maximum(target[:, 3], _EPS))
            - jnp.arctan(pred[:, 2] / jnp.maximum(pred[:, 3], _EPS))) ** 2
        beat = jax.lax.stop_gradient(v / (1.0 + _EPS - iou + v))
        return 1.0 - jnp.clip(iou - (center_dis / convex_dis + beat * v), -1.0, 1.0)
    if loss_type == "eiou":
        dis_w = (pred[:, 2] - target[:, 2]) ** 2
        dis_h = (pred[:, 3] - target[:, 3]) ** 2
        c_w = (cmax[:, 0] - cmin[:, 0]) ** 2 + _EPS
        c_h = (cmax[:, 1] - cmin[:, 1]) ** 2 + _EPS
        return 1.0 - jnp.clip(
            iou - center_dis / convex_dis - dis_w / c_w - dis_h / c_h, -1.0, 1.0)
    raise ValueError("loss_type wrong")


# --------------------------------------------------------------------------- #
# public API (matches IouLoss.forward)
# --------------------------------------------------------------------------- #
def iou_loss(pred, target, reduction="none", loss_type="iou", *, force_pallas=False):
    """pred, target: [bs, 4] xywh. Matches IouLoss.forward."""
    assert pred.shape[0] == target.shape[0]
    pred = jnp.asarray(pred).reshape(-1, 4).astype(jnp.float32)
    target = jnp.asarray(target).reshape(-1, 4).astype(jnp.float32)
    n = pred.shape[0]

    if not (force_pallas or n >= _PALLAS_MIN_BOXES):
        # small-N fallback: fixed pallas_call + relayout overhead would dominate
        loss = _iou_loss_ref(pred, target, loss_type)
        if reduction == "mean":
            return jnp.mean(loss)
        if reduction == "sum":
            return jnp.sum(loss)
        return loss

    s, ts, grid = _choose_tiling(n)
    pred_planes = _to_planes(pred, n, s)
    tgt_planes = _to_planes(target, n, s)
    return _pallas_run(pred_planes, tgt_planes, loss_type=loss_type,
                       n=n, ts=ts, grid=grid, reduction=reduction)


# --------------------------------------------------------------------------- #
# tests
# --------------------------------------------------------------------------- #
def _make_boxes(key, n):
    k1, k2, k3, k4 = jax.random.split(key, 4)
    pred = jnp.concatenate(
        [jax.random.uniform(k1, (n, 2)) * 10.0,
         jax.random.uniform(k2, (n, 2)) * 5.0 + 0.1], axis=1).astype(jnp.float32)
    target = jnp.concatenate(
        [jax.random.uniform(k3, (n, 2)) * 10.0,
         jax.random.uniform(k4, (n, 2)) * 5.0 + 0.1], axis=1).astype(jnp.float32)
    return pred, target


if __name__ == "__main__":
    key = jax.random.PRNGKey(0)
    k_small, k_large = jax.random.split(key, 2)

    # --- small shape (module-like): bs=8, default config, forced through Pallas ---
    bs = 8
    pred_s, tgt_s = _make_boxes(k_small, bs)
    loss = iou_loss(pred_s, tgt_s, reduction="none", loss_type="iou", force_pallas=True)
    jax.block_until_ready(loss)
    assert loss.shape == (bs,)
    ref = _iou_loss_ref(pred_s, tgt_s, "iou")
    assert jnp.allclose(loss, ref, atol=1e-5, rtol=1e-5), (loss, ref)

    # --- larger N: natural Pallas path, all variants vs. pure-JAX reference ---
    # (non-'iou' variants use the EUP approx reciprocal -> looser tolerance)
    n = 4096
    pred_l, tgt_l = _make_boxes(k_large, n)
    for lt, tol in (("iou", 1e-5), ("giou", 1e-2), ("diou", 1e-2),
                    ("ciou", 1e-2), ("eiou", 1e-2)):
        got = iou_loss(pred_l, tgt_l, reduction="none", loss_type=lt)
        jax.block_until_ready(got)
        assert got.shape == (n,)
        want = _iou_loss_ref(pred_l, tgt_l, lt)
        assert jnp.allclose(got, want, atol=tol, rtol=tol), lt

    # --- reductions: partial-sum kernel path vs. reference reduction ---
    got_m = iou_loss(pred_l, tgt_l, reduction="mean", loss_type="iou")
    want_m = jnp.mean(_iou_loss_ref(pred_l, tgt_l, "iou"))
    got_s = iou_loss(pred_l, tgt_l, reduction="sum", loss_type="giou")
    want_s = jnp.sum(_iou_loss_ref(pred_l, tgt_l, "giou"))
    jax.block_until_ready((got_m, got_s))
    assert jnp.allclose(got_m, want_m, rtol=1e-3, atol=1e-3), (got_m, want_m)
    assert jnp.allclose(got_s, want_s, rtol=1e-2, atol=1e-2 * n), (got_s, want_s)

    # --- zero-relayout planes entry point (f32), vs. reference ---
    s_pl, _, _ = _choose_tiling(n)
    pred_planes = _to_planes(pred_l, n, s_pl)
    tgt_planes = _to_planes(tgt_l, n, s_pl)
    got_p = iou_loss_from_planes(pred_planes, tgt_planes, n=n,
                                 reduction="none", loss_type="diou")
    jax.block_until_ready(got_p)
    assert jnp.allclose(got_p, _iou_loss_ref(pred_l, tgt_l, "diou"),
                        atol=1e-2, rtol=1e-2)

    # --- bf16 planes smoke test (half input HBM traffic; compute stays f32) ---
    got_bf = iou_loss_from_planes(pred_planes.astype(jnp.bfloat16),
                                  tgt_planes.astype(jnp.bfloat16),
                                  n=n, reduction="mean", loss_type="eiou")
    jax.block_until_ready(got_bf)
    assert bool(jnp.isfinite(got_bf))

    # --- small-N fallback path (pure fused XLA) ---
    fb = iou_loss(pred_s, tgt_s, reduction="mean", loss_type="eiou")
    jax.block_until_ready(fb)

    print("KERNEL_OK")
</pallas_src>

<mosaic_0001>
module attributes {stable_mosaic.version = 11 : i64} {
  func.func @_iou_loss_kernel(%arg0: i32, %arg1: memref<4x8x128xf32, #tpu.memory_space<vmem>>, %arg2: memref<4x8x128xf32, #tpu.memory_space<vmem>>, %arg3: memref<8x128xf32, #tpu.memory_space<vmem>>) attributes {dimension_semantics = [#tpu.dimension_semantics<parallel>], iteration_bounds = array<i64: 1>, scalar_prefetch = 0 : i64, scratch_operands = 0 : i64, tpu.core_type = #tpu.core_type<tc>, window_params = [{transform_indices = @transform_0, window_bounds = array<i64: 4, 8, 128>}, {transform_indices = @transform_1, window_bounds = array<i64: 4, 8, 128>}, {transform_indices = @transform_2, window_bounds = array<i64: 8, 128>}]} {
    %c0 = arith.constant 0 : index
    %c0_0 = arith.constant 0 : index
    %c0_1 = arith.constant 0 : index
    %0 = vector.load %arg1[%c0, %c0_0, %c0_1] : memref<4x8x128xf32, #tpu.memory_space<vmem>>, vector<1x8x128xf32>
    %1 = vector.shape_cast %0 : vector<1x8x128xf32> to vector<8x128xf32>
    %c1 = arith.constant 1 : index
    %c0_2 = arith.constant 0 : index
    %c0_3 = arith.constant 0 : index
    %2 = vector.load %arg1[%c1, %c0_2, %c0_3] : memref<4x8x128xf32, #tpu.memory_space<vmem>>, vector<1x8x128xf32>
    %3 = vector.shape_cast %2 : vector<1x8x128xf32> to vector<8x128xf32>
    %c2 = arith.constant 2 : index
    %c0_4 = arith.constant 0 : index
    %c0_5 = arith.constant 0 : index
    %4 = vector.load %arg1[%c2, %c0_4, %c0_5] : memref<4x8x128xf32, #tpu.memory_space<vmem>>, vector<1x8x128xf32>
    %5 = vector.shape_cast %4 : vector<1x8x128xf32> to vector<8x128xf32>
    %c3 = arith.constant 3 : index
    %c0_6 = arith.constant 0 : index
    %c0_7 = arith.constant 0 : index
    %6 = vector.load %arg1[%c3, %c0_6, %c0_7] : memref<4x8x128xf32, #tpu.memory_space<vmem>>, vector<1x8x128xf32>
    %7 = vector.shape_cast %6 : vector<1x8x128xf32> to vector<8x128xf32>
    %c0_8 = arith.constant 0 : index
    %c0_9 = arith.constant 0 : index
    %c0_10 = arith.constant 0 : index
    %8 = vector.load %arg2[%c0_8, %c0_9, %c0_10] : memref<4x8x128xf32, #tpu.memory_space<vmem>>, vector<1x8x128xf32>
    %9 = vector.shape_cast %8 : vector<1x8x128xf32> to vector<8x128xf32>
    %c1_11 = arith.constant 1 : index
    %c0_12 = arith.constant 0 : index
    %c0_13 = arith.constant 0 : index
    %10 = vector.load %arg2[%c1_11, %c0_12, %c0_13] : memref<4x8x128xf32, #tpu.memory_space<vmem>>, vector<1x8x128xf32>
    %11 = vector.shape_cast %10 : vector<1x8x128xf32> to vector<8x128xf32>
    %c2_14 = arith.constant 2 : index
    %c0_15 = arith.constant 0 : index
    %c0_16 = arith.constant 0 : index
    %12 = vector.load %arg2[%c2_14, %c0_15, %c0_16] : memref<4x8x128xf32, #tpu.memory_space<vmem>>, vector<1x8x128xf32>
    %13 = vector.shape_cast %12 : vector<1x8x128xf32> to vector<8x128xf32>
    %c3_17 = arith.constant 3 : index
    %c0_18 = arith.constant 0 : index
    %c0_19 = arith.constant 0 : index
    %14 = vector.load %arg2[%c3_17, %c0_18, %c0_19] : memref<4x8x128xf32, #tpu.memory_space<vmem>>, vector<1x8x128xf32>
    %15 = vector.shape_cast %14 : vector<1x8x128xf32> to vector<8x128xf32>
    %cst = arith.constant 5.000000e-01 : f32
    %16 = vector.broadcast %cst : f32 to vector<8x128xf32>
    %17 = arith.mulf %5, %16 : vector<8x128xf32>
    %cst_20 = arith.constant 5.000000e-01 : f32
    %18 = vector.broadcast %cst_20 : f32 to vector<8x128xf32>
    %19 = arith.mulf %7, %18 : vector<8x128xf32>
    %cst_21 = arith.constant 5.000000e-01 : f32
    %20 = vector.broadcast %cst_21 : f32 to vector<8x128xf32>
    %21 = arith.mulf %13, %20 : vector<8x128xf32>
    %cst_22 = arith.constant 5.000000e-01 : f32
    %22 = vector.broadcast %cst_22 : f32 to vector<8x128xf32>
    %23 = arith.mulf %15, %22 : vector<8x128xf32>
    %24 = arith.subf %1, %17 : vector<8x128xf32>
    %25 = arith.addf %1, %17 : vector<8x128xf32>
    %26 = arith.subf %3, %19 : vector<8x128xf32>
    %27 = arith.addf %3, %19 : vector<8x128xf32>
    %28 = arith.subf %9, %21 : vector<8x128xf32>
    %29 = arith.addf %9, %21 : vector<8x128xf32>
    %30 = arith.subf %11, %23 : vector<8x128xf32>
    %31 = arith.addf %11, %23 : vector<8x128xf32>
    %32 = arith.maximumf %24, %28 : vector<8x128xf32>
    %33 = arith.maximumf %26, %30 : vector<8x128xf32>
    %34 = arith.minimumf %25, %29 : vector<8x128xf32>
    %35 = arith.minimumf %27, %31 : vector<8x128xf32>
    %36 = arith.mulf %5, %7 : vector<8x128xf32>
    %37 = arith.mulf %13, %15 : vector<8x128xf32>
    %38 = arith.cmpf olt, %32, %34 : vector<8x128xf32>
    %39 = arith.cmpf olt, %33, %35 : vector<8x128xf32>
    %40 = arith.andi %38, %39 : vector<8x128xi1>
    %41 = arith.subf %34, %32 : vector<8x128xf32>
    %42 = arith.subf %35, %33 : vector<8x128xf32>
    %43 = arith.mulf %41, %42 : vector<8x128xf32>
    %cst_23 = arith.constant 0.000000e+00 : f32
    %44 = vector.broadcast %cst_23 : f32 to vector<8x128xf32>
    %45 = arith.select %40, %43, %44 : vector<8x128xi1>, vector<8x128xf32>
    %46 = arith.addf %36, %37 : vector<8x128xf32>
    %47 = arith.subf %46, %45 : vector<8x128xf32>
    %cst_24 = arith.constant 1.000000e-07 : f32
    %48 = vector.broadcast %cst_24 : f32 to vector<8x128xf32>
    %49 = arith.addf %47, %48 : vector<8x128xf32>
    %50 = arith.divf %45, %49 : vector<8x128xf32>
    %51 = arith.mulf %50, %50 : vector<8x128xf32>
    %cst_25 = arith.constant 1.000000e+00 : f32
    %52 = vector.broadcast %cst_25 : f32 to vector<8x128xf32>
    %53 = arith.subf %52, %51 : vector<8x128xf32>
    %c0_26 = arith.constant 0 : index
    %c0_27 = arith.constant 0 : index
    %54 = vector.load %arg3[%c0_26, %c0_27] : memref<8x128xf32, #tpu.memory_space<vmem>>, vector<8x128xf32>
    tpu.vector_store %arg3[%c0_26, %c0_27], %53 {strides = array<i32>} : memref<8x128xf32, #tpu.memory_space<vmem>>, vector<8x128xf32>,
    return
  }
  func.func @transform_0(%arg0: i32) -> (i32, i32, i32) {
    %c0_i32 = arith.constant 0 : i32
    %c0_i32_0 = arith.constant 0 : i32
    %c0_i32_1 = arith.constant 0 : i32
    return %c0_i32, %arg0, %c0_i32_0 : i32, i32, i32
  }
  func.func @transform_1(%arg0: i32) -> (i32, i32, i32) {
    %c0_i32 = arith.constant 0 : i32
    %c0_i32_0 = arith.constant 0 : i32
    %c0_i32_1 = arith.constant 0 : i32
    return %c0_i32, %arg0, %c0_i32_0 : i32, i32, i32
  }
  func.func @transform_2(%arg0: i32) -> (i32, i32) {
    %c0_i32 = arith.constant 0 : i32
    %c0_i32_0 = arith.constant 0 : i32
    return %arg0, %c0_i32 : i32, i32
  }
}

</mosaic_0001>

<bundles_post_ra>
// kernel: tpu_custom_call.1
= control target key start
LH: loop header
LB: loop body
LE: loop exit
PB: predicated region body
PF: predicated region fallthrough
CT: control target
= control target key end

     0   :  { %7 = vsyncpa [#allocation3], 0  ;;  %s205_s0 = inlined_call_operand.hbm [shape: f32[4,8,128], index: 0, kind: input, shape index: {}]   ;;  %s206_s1 = inlined_call_operand.hbm [shape: f32[4,8,128], index: 1, kind: input, shape index: {}]   ;;  %s207_s2 = inlined_call_operand.hbm [shape: f32[8,128], index: 2, kind: output, shape index: {}]  }
   0x1   :  { %8 = vsyncpa [#allocation6], 0 }
   0x2   :  { %9 = vsyncpa [#allocation4], 0  ;;  %s176_s9 = smov [#allocation2]  }
   0x3   :  { %s15_s10 = sshll.u32 %s176_s9, 4  ;;  %s16_s10 = int_to_ptr.vmem [resolvable:$true] %s15_s10 }
   0x4   :  { %s118_s11 = scalar_lea.vmem %s16_s10, 512  ;;  %p123_p1 = scmp.lt.s32.totalorder %s16_s10, %s16_s10 }
   0x5   :  { %p119_p0 = scmp.ne.s32.totalorder %s16_s10, %s118_s11  ;;  %p124_p2 = scmp.lt.s32.totalorder %s118_s11, %s118_s11 }
   0x7   :  { %p125_p3 = por %p124_p2, %p123_p1 }
   0x9   :  { %p126_p4 = pnand %p125_p3, %p119_p0 }
   0xb   :  { %129 = shalt.err (!%p126_p4)
}
   0xc   :  { %s177_s12 = smov 128   ;;  %s178_s13 = smov 8  }
   0xd   :  { %21 = dma.hbm_to_vmem [thread:$0]  %s205_s0, 512, %s16_s10, [#allocation3], %s177_s12, %s177_s12, %s178_s13  }
   0xe   :  { %s179_s16 = smov [#allocation5]  }
   0xf   :  { %s27_s17 = sshll.u32 %s179_s16, 4  ;;  %s28_s17 = int_to_ptr.vmem [resolvable:$true] %s27_s17 }
  0x10   :  { %s138_s18 = scalar_lea.vmem %s28_s17, 512  ;;  %p143_p6 = scmp.lt.s32.totalorder %s28_s17, %s28_s17 }
  0x11   :  { %p139_p5 = scmp.ne.s32.totalorder %s28_s17, %s138_s18  ;;  %p144_p7 = scmp.lt.s32.totalorder %s138_s18, %s138_s18 }
  0x13   :  { %p145_p8 = por %p144_p7, %p143_p6 }
  0x15   :  { %p146_p9 = pnand %p145_p8, %p139_p5 }
  0x17   :  { %149 = shalt.err (!%p146_p9)
}
  0x18   :  { %33 = dma.hbm_to_vmem [thread:$0]  %s206_s1, 512, %s28_s17, [#allocation6], %s177_s12, %s177_s12, %s178_s13  }
  0x19   :  { %170 = dma.done.wait [#allocation3], 512  }
  0x1a   :  { %171 = vsyncadd [#allocation3], 4294966784 }
  0x1b   :  { %172 = dma.done.wait [#allocation6], 512  }
  0x1c   :  { %173 = vsyncadd [#allocation6], 4294966784  ;;  %v40_v0 = vld [vmem:[#allocation2] sm:$0xff]  ;;  %v44_v1 = vld [vmem:[#allocation2 + $0x10] sm:$0xff]  ;;  %s180_s0 = smov [#allocation7]  }
  0x1d   :  { %v42_v2 = vld [vmem:[#allocation2 + $0x8] sm:$0xff]  ;;  %v46_v3 = vld [vmem:[#allocation2 + $0x18] sm:$0xff]  ;;  %v47_v4 = vld [vmem:[#allocation5] sm:$0xff]  ;;  %v54_v5 = vmul.f32 0.5, %v44_v1  ;;  %s93_s1 = sshll.u32 %s180_s0, 4  ;;  %s94_s1 = int_to_ptr.vmem [resolvable:$true] %s93_s1 }
  0x1e   :  { %v49_v6 = vld [vmem:[#allocation5 + $0x8] sm:$0xff]  ;;  %v51_v7 = vld [vmem:[#allocation5 + $0x10] sm:$0xff]  ;;  %v53_v8 = vld [vmem:[#allocation5 + $0x18] sm:$0xff]  ;;  %v55_v9 = vmul.f32 0.5, %v46_v3  ;;  %v70_v20 = vmul.f32 %v46_v3, %v44_v1  ;;  %s150_s21 = scalar_lea.vmem %s94_s1, 128  ;;  %p155_p11 = scmp.lt.s32.totalorder %s94_s1, %s94_s1 }
  0x1f   :  { %v56_v10 = vmul.f32 0.5, %v51_v7  ;;  %v57_v11 = vmul.f32 0.5, %v53_v8  ;;  %v58_v12 = vsub.f32 %v40_v0, %v54_v5  ;;  %v59_v13 = vadd.f32 %v54_v5, %v40_v0  ;;  %p151_p10 = scmp.ne.s32.totalorder %s94_s1, %s150_s21  ;;  %p156_p12 = scmp.lt.s32.totalorder %s150_s21, %s150_s21 }
  0x20   :  { %v60_v14 = vsub.f32 %v42_v2, %v55_v9  ;;  %v61_v15 = vadd.f32 %v55_v9, %v42_v2  ;;  %v71_v21 = vmul.f32 %v53_v8, %v51_v7 }
  0x21   :  { %v62_v16 = vsub.f32 %v47_v4, %v56_v10  ;;  %v63_v17 = vadd.f32 %v56_v10, %v47_v4  ;;  %v64_v18 = vsub.f32 %v49_v6, %v57_v11  ;;  %v65_v19 = vadd.f32 %v57_v11, %v49_v6  ;;  %p157_p13 = por %p156_p12, %p155_p11 }
  0x22   :  { %v79_v28 = vadd.f32 %v71_v21, %v70_v20 }
  0x23   :  { %v66_v22 = vmax.f32 %v58_v12, %v62_v16  ;;  %v67_v23 = vmax.f32 %v60_v14, %v64_v18  ;;  %v68_v24 = vmin.f32 %v59_v13, %v63_v17  ;;  %v69_v25 = vmin.f32 %v61_v15, %v65_v19  ;;  %p158_p0 = pnand %p157_p13, %p151_p10 }
  0x25   :  { %vm72_vm0 = vcmp.lt.f32.partialorder %v66_v22, %v68_v24  ;;  %vm73_vm1 = vcmp.lt.f32.partialorder %v67_v23, %v69_v25  ;;  %v75_v26 = vsub.f32 %v68_v24, %v66_v22  ;;  %v76_v27 = vsub.f32 %v69_v25, %v67_v23 }
  0x26   :  { %vm74_vm2 = vmand %vm72_vm0, %vm73_vm1 }
  0x27   :  { %v77_v29 = vmul.f32 %v76_v27, %v75_v26 }
  0x29   :  { %v78_v30 = vsel %vm74_vm2, %v77_v29, 0.0 }
  0x2a   :  { %v80_v31 = vsub.f32 %v79_v28, %v78_v30 }
  0x2c   :  { %v81_v32 = vadd.f32 1e-07, %v80_v31 }
  0x2e   :  { %108 = vrcp.f32 %v81_v32 }
  0x3b   :  { %v109_v33 = vpop.eup %108 }
  0x3c   :  { %v83_v34 = vmul.f32 %v109_v33, %v78_v30 }
  0x3e   :  { %v84_v35 = vmul.f32 %v83_v34, %v83_v34 }
  0x40   :  { %v85_v36 = vsub.f32 1.0, %v84_v35 }
  0x42   :  { %86 = vst [vmem:[#allocation7] sm:$0xff] %v85_v36 }
  0x43   :  { %161 = shalt.err (!%p158_p0)
}
  0x44   :  { %96 = dma.vmem_to_hbm [thread:$0]  %s94_s1, 128, %s207_s2, [#allocation4]  }
  0x45   :  { %174 = dma.done.wait [#allocation4], 128  }
  0x46   :  { %175 = vsyncadd [#allocation4], 4294967168 }
  0x47   :  { %100 = vsyncpa [#allocation3], 1 }
  0x48   :  { %101 = vsyncpa [#allocation6], 1 }
  0x49   :  { %102 = vsyncpa [#allocation4], 1 }

</bundles_post_ra>
